<compile_context>
chip_gen: v5e
topology: v5e:2x2
jax: 0.10.0
libtpu: 0.0.40
codegen_flags: <defaults>
</compile_context>

<pallas_src>
import functools

import jax
import jax.numpy as jnp
from jax.experimental import pallas as pl
from jax.experimental.pallas import tpu as pltpu

LANE = 128
SUBLANE = 8


def _round_up(x, m):
    return (x + m - 1) // m * m


def _pick_row_tile(ho, wo, cpad):
    """Largest VMEM-safe row tile.

    Per-tile f32 temporaries are ~3 buffers of row_tile*wo*cpad elements
    (matmul acc, SiLU result, select temp); a ~16 MiB cap keeps the kernel
    comfortably inside v7x's 64 MiB VMEM alongside the double-buffered bf16
    input blocks.  Also cap at ~8K output rows per grid step, which already
    amortizes the ~0.35us fixed per-step overhead.  On v5e/v6e (128 MiB VMEM)
    this typically yields whole-image tiles.
    """
    budget = 16 * 1024 * 1024
    per_row = wo * cpad * 4 * 3
    rt = min(ho, max(1, budget // max(per_row, 1)), max(1, 8192 // max(wo, 1)))
    return max(1, int(rt))


# ----------------------------- Pallas kernels -------------------------------

def _stem_gap_kernel(body_ref, halo_ref, w_ref, b_ref, gap_ref, *, ho, wo, row_tile):
    """Fused 3x3/s2 conv (space-to-depth form) + SiLU + global-average-pool.

    Grid = (batch, row_tiles).  gap_ref is an accumulator output block that
    stays resident across the 'arbitrary' row-tile axis.  body_ref holds the
    tile's rows and halo_ref the single row below it (no halo duplication in
    HBM).
    """
    t = pl.program_id(1)
    last = pl.num_programs(1) - 1

    @pl.when(t == 0)
    def _init():
        gap_ref[...] = jnp.zeros_like(gap_ref)

    # (row_tile + 1, wq, c4): tile rows + one halo row (leading-axis concat).
    x = jnp.concatenate([body_ref[0], halo_ref[0]], axis=0)

    cout = w_ref.shape[-1]                            # padded to 128 lanes
    # 2x2 stride-1 conv over the space-to-depth input == the original 3x3/s2
    # conv.  TODO(synk): fuse the four K=4*Cin taps into one K=16*Cin MXU call
    # via a lane concat once unaligned minor-dim concat lowering is verified;
    # the stem is HBM-bound, so the four small dots are not the bottleneck.
    acc = None
    for k, (dr, dc) in enumerate(((0, 0), (0, 1), (1, 0), (1, 1))):
        tap = x[dr:dr + row_tile, dc:dc + wo, :].reshape(row_tile * wo, -1)
        part = jnp.dot(tap, w_ref[k], preferred_element_type=jnp.float32)
        acc = part if acc is None else acc + part
    y = acc + b_ref[...]                              # bias (f32)
    # SiLU in f32 (v5e has no bf16 VPU/EUP; could run bf16 on v6e/v7x).
    y = y * jax.nn.sigmoid(y)

    if ho % row_tile == 0:
        # every tile is full -> no masking work at all
        gap_ref[...] += jnp.sum(y, axis=0).reshape(1, 1, cout)
    else:
        @pl.when(t != last)
        def _full_tile():
            gap_ref[...] += jnp.sum(y, axis=0).reshape(1, 1, cout)

        @pl.when(t == last)
        def _partial_tile():
            # mask the zero-padded rows of the final (partial) tile only
            row = jax.lax.broadcasted_iota(jnp.int32, (row_tile * wo, 1), 0) // wo
            valid = (t * row_tile + row) < ho
            gap_ref[...] += jnp.sum(jnp.where(valid, y, 0.0),
                                    axis=0).reshape(1, 1, cout)

    @pl.when(t == last)
    def _finalize():
        gap_ref[...] = gap_ref[...] * (1.0 / float(ho * wo))


def _head_kernel(alpha_ref, g_ref, wp_ref, bp_ref, w1_ref, b1_ref,
                 w2_ref, b2_ref, w3_ref, b3_ref, o_ref):
    """GAP features -> embedding proj -> (Linear+BN folded)->PReLU x2 -> logits."""
    g = g_ref[...]                                                       # (8, 128)
    emb = jnp.dot(g, wp_ref[...], preferred_element_type=jnp.float32) + bp_ref[...]
    h = jnp.dot(emb, w1_ref[...], preferred_element_type=jnp.float32) + b1_ref[...]
    h = jnp.where(h >= 0.0, h, alpha_ref[0] * h)                         # PReLU
    h = jnp.dot(h, w2_ref[...], preferred_element_type=jnp.float32) + b2_ref[...]
    h = jnp.where(h >= 0.0, h, alpha_ref[1] * h)                         # PReLU
    o_ref[...] = jnp.dot(h, w3_ref[...], preferred_element_type=jnp.float32) + b3_ref[...]


# ----------------------------- kernel wrappers -------------------------------

def stem_conv_gap(xs, w4, b_conv, *, ho, wo, row_tile, n_tiles):
    n, _rows, wq, c4 = xs.shape
    cpad = w4.shape[-1]
    kernel = functools.partial(_stem_gap_kernel, ho=ho, wo=wo, row_tile=row_tile)
    return pl.pallas_call(
        kernel,
        out_shape=jax.ShapeDtypeStruct((n, 1, cpad), jnp.float32),
        grid=(n, n_tiles),
        in_specs=[
            # tile body rows (un-tiled HBM array, no halo duplication)
            pl.BlockSpec((1, row_tile, wq, c4), lambda b, t: (b, t, 0, 0)),
            # single halo row below the tile; block-row size 1 => block index
            # is the element row.
            pl.BlockSpec((1, 1, wq, c4), lambda b, t: (b, (t + 1) * row_tile, 0, 0)),
            # weights / bias: constant block index -> fetched once, stay resident
            pl.BlockSpec((4, c4, cpad), lambda b, t: (0, 0, 0)),
            pl.BlockSpec((1, cpad), lambda b, t: (0, 0)),
        ],
        # same output block across the row-tile axis -> resident GAP accumulator
        out_specs=pl.BlockSpec((1, 1, cpad), lambda b, t: (b, 0, 0)),
        compiler_params=pltpu.CompilerParams(
            # megacore: batch axis is 'parallel'.
            # TODO(synk): for batch==1 on v7x, split the row axis across the two
            # TensorCores (two partial GAP accumulators + tiny epilogue).
            dimension_semantics=("parallel", "arbitrary"),
            # safe on v7x's 64 MiB VMEM; can be raised to ~96-112 MiB on
            # v5e/v6e when using whole-image tiles at large resolutions.
            vmem_limit_bytes=48 * 1024 * 1024,
        ),
    )(xs, xs, w4, b_conv)


def classifier_head(gap_padded, prep):
    npad = gap_padded.shape[0]
    ncpad = prep["w3"].shape[-1]
    return pl.pallas_call(
        _head_kernel,
        out_shape=jax.ShapeDtypeStruct((npad, ncpad), jnp.float32),
        in_specs=[pl.BlockSpec(memory_space=pltpu.MemorySpace.SMEM)]     # PReLU alphas
                 + [pl.BlockSpec(memory_space=pltpu.MemorySpace.VMEM)] * 9,
        out_specs=pl.BlockSpec(memory_space=pltpu.MemorySpace.VMEM),
    )(prep["alpha"], gap_padded, prep["wp"], prep["bp"], prep["w1"], prep["b1"],
      prep["w2"], prep["b2"], prep["w3"], prep["b3"])


def effnet_forward(x_nchw, prep, num_classes, row_tile=None):
    # NCHW (PyTorch) -> NHWC; cast to bf16 immediately so every later host-side
    # pad / reshape pass and the kernel input DMA move half the bytes.
    x = jnp.transpose(x_nchw, (0, 2, 3, 1)).astype(jnp.bfloat16)
    n, h, w, _c = x.shape
    ho = (h + 2 - 3) // 2 + 1
    wo = (w + 2 - 3) // 2 + 1
    cpad = prep["w4"].shape[-1]
    if row_tile is None:
        row_tile = _pick_row_tile(ho, wo, cpad)       # big tiles (whole image here)
    row_tile = max(1, min(row_tile, ho))
    n_tiles = pl.cdiv(ho, row_tile)

    # conv padding=1 plus bottom/right zero pad so the padded image is exactly
    # 2*(ho+1) x 2*(wo+1); then space-to-depth(2x2) -> [N, ho+1, wo+1, 4*Cin].
    h_pad, w_pad = 2 * (ho + 1), 2 * (wo + 1)
    xp = jnp.pad(x, ((0, 0), (1, h_pad - h - 1), (1, w_pad - w - 1), (0, 0)))
    xs = xp.reshape(n, ho + 1, 2, wo + 1, 2, xp.shape[-1])
    xs = xs.transpose(0, 1, 3, 2, 4, 5).reshape(n, ho + 1, wo + 1, -1)

    # rows needed so every body tile and its halo row stay in bounds
    need_rows = n_tiles * row_tile + 1
    if need_rows > ho + 1:
        xs = jnp.pad(xs, ((0, 0), (0, need_rows - (ho + 1)), (0, 0), (0, 0)))

    gap = stem_conv_gap(xs, prep["w4"], prep["b_conv"],
                        ho=ho, wo=wo, row_tile=row_tile, n_tiles=n_tiles)
    gap = gap.reshape(n, -1)                                   # (N, Cpad)

    npad = _round_up(max(n, SUBLANE), SUBLANE)                 # fill the sublanes
    gap = jnp.pad(gap, ((0, npad - n), (0, 0)))
    logits = classifier_head(gap, prep)
    return logits[:n, :num_classes]                            # drop batch/class padding


# ----------------------------- parameters ------------------------------------

def init_params(key, cin, cstem, embedding_size, num_classes):
    """Raw, PyTorch-like parameters (Linear weights stored pre-transposed as [in, out])."""
    ks = jax.random.split(key, 12)

    def uinit(k, shape, fan_in):
        bound = float(fan_in) ** -0.5
        return jax.random.uniform(k, shape, jnp.float32, -bound, bound)

    return dict(
        # stem conv, PyTorch layout (cout, cin, kh, kw)
        w_conv=uinit(ks[0], (cstem, cin, 3, 3), cin * 9),
        b_conv=uinit(ks[1], (cstem,), cin * 9),
        # embedding projection (stand-in for the efficientnet conv_head + pooling)
        wp=uinit(ks[2], (cstem, embedding_size), cstem),
        bp=uinit(ks[3], (embedding_size,), cstem),
        # classifier head Linears
        w1=uinit(ks[4], (embedding_size, 256), embedding_size),
        b1=uinit(ks[5], (256,), embedding_size),
        w2=uinit(ks[6], (256, 128), 256),
        b2=uinit(ks[7], (128,), 256),
        w3=uinit(ks[8], (128, num_classes), 128),
        b3=uinit(ks[9], (num_classes,), 128),
        # BatchNorm1d (PyTorch defaults, inference mode)
        bn1_gamma=jnp.ones((256,)), bn1_beta=jnp.zeros((256,)),
        bn1_mean=jnp.zeros((256,)), bn1_var=jnp.ones((256,)),
        bn2_gamma=jnp.ones((128,)), bn2_beta=jnp.zeros((128,)),
        bn2_mean=jnp.zeros((128,)), bn2_var=jnp.ones((128,)),
        # PReLU default single-parameter alpha
        alpha1=jnp.float32(0.25), alpha2=jnp.float32(0.25),
    )


def prepare_params(params, *, cin, cstem, embedding_size, num_classes):
    """Offline folding / zero-padding into TPU-friendly (lane-dense) layouts."""
    cpad = _round_up(cstem, LANE)
    epad = _round_up(embedding_size, LANE)
    ncpad = _round_up(num_classes, LANE)
    c4 = 4 * cin

    # 3x3/s2 conv weights -> one (4*cin, cpad) matrix per 2x2 space-to-depth shift
    w_conv = params["w_conv"]
    w4 = jnp.zeros((4, c4, cpad), jnp.float32)
    for k, (dr, dc) in enumerate(((0, 0), (0, 1), (1, 0), (1, 1))):
        for p in range(2):
            for q in range(2):
                di, dj = 2 * dr + p, 2 * dc + q
                if di < 3 and dj < 3:
                    blk = jnp.transpose(w_conv[:, :, di, dj])      # (cin, cstem)
                    w4 = w4.at[k, (2 * p + q) * cin:(2 * p + q + 1) * cin,
                               :cstem].set(blk)
    b_conv = jnp.zeros((1, cpad), jnp.float32).at[0, :cstem].set(params["b_conv"])

    wp = jnp.zeros((cpad, epad), jnp.float32).at[:cstem, :embedding_size].set(params["wp"])
    bp = jnp.zeros((1, epad), jnp.float32).at[0, :embedding_size].set(params["bp"])

    # fold inference-mode BatchNorm1d into the preceding Linear layers
    def fold(wl, bl, gamma, beta, mean, var, eps=1e-5):
        s = gamma / jnp.sqrt(var + eps)
        return wl * s[None, :], (bl * s + beta - mean * s)[None, :]

    w1f, b1 = fold(params["w1"], params["b1"], params["bn1_gamma"], params["bn1_beta"],
                   params["bn1_mean"], params["bn1_var"])
    w2, b2 = fold(params["w2"], params["b2"], params["bn2_gamma"], params["bn2_beta"],
                  params["bn2_mean"], params["bn2_var"])
    w1 = jnp.zeros((epad, 256), jnp.float32).at[:embedding_size, :].set(w1f)
    w3 = jnp.zeros((128, ncpad), jnp.float32).at[:, :num_classes].set(params["w3"])
    b3 = jnp.zeros((1, ncpad), jnp.float32).at[0, :num_classes].set(params["b3"])

    alpha = jnp.stack([params["alpha1"], params["alpha2"]]).astype(jnp.float32)

    return dict(
        w4=w4.astype(jnp.bfloat16),      # bf16 MXU operands for the stem
        b_conv=b_conv,
        wp=wp, bp=bp,
        w1=w1, b1=b1,
        w2=w2, b2=b2,
        w3=w3, b3=b3,
        alpha=alpha,
    )


# ----------------------------- pure-JAX reference ----------------------------

def reference_forward(x_nchw, params, num_classes):
    x = jnp.transpose(x_nchw, (0, 2, 3, 1)).astype(jnp.float32)
    n, h, w, c = x.shape
    ho = (h + 2 - 3) // 2 + 1
    wo = (w + 2 - 3) // 2 + 1
    xp = jnp.pad(x, ((0, 0), (1, 1), (1, 1), (0, 0)))
    cols = []
    for di in range(3):
        for dj in range(3):
            cols.append(xp[:, di:di + 2 * ho:2, dj:dj + 2 * wo:2, :])
    patches = jnp.concatenate(cols, axis=-1).reshape(n * ho * wo, 9 * c)
    w_stem = jnp.transpose(params["w_conv"], (2, 3, 1, 0)).reshape(9 * c, -1)
    y = jnp.dot(patches.astype(jnp.bfloat16), w_stem.astype(jnp.bfloat16),
                preferred_element_type=jnp.float32) + params["b_conv"][None, :]
    y = y * jax.nn.sigmoid(y)
    gap = jnp.mean(y.reshape(n, ho * wo, -1), axis=1)

    def bn(t, g, b, m, v, eps=1e-5):
        return (t - m) / jnp.sqrt(v + eps) * g + b

    def prelu(t, a):
        return jnp.where(t >= 0, t, a * t)

    emb = gap @ params["wp"] + params["bp"]
    hh = emb @ params["w1"] + params["b1"]
    hh = prelu(bn(hh, params["bn1_gamma"], params["bn1_beta"],
                  params["bn1_mean"], params["bn1_var"]), params["alpha1"])
    hh = hh @ params["w2"] + params["b2"]
    hh = prelu(bn(hh, params["bn2_gamma"], params["bn2_beta"],
                  params["bn2_mean"], params["bn2_var"]), params["alpha2"])
    return hh @ params["w3"] + params["b3"]


# ----------------------------------- main -------------------------------------

if __name__ == "__main__":
    num_classes = 10
    embedding_size = 32
    cin, cstem = 3, 8

    key = jax.random.PRNGKey(0)
    kp, kx = jax.random.split(key)
    params = init_params(kp, cin, cstem, embedding_size, num_classes)
    prep = prepare_params(params, cin=cin, cstem=cstem,
                          embedding_size=embedding_size, num_classes=num_classes)

    x = jax.random.normal(kx, (2, cin, 16, 16), jnp.float32)    # NCHW like PyTorch

    ref = jax.block_until_ready(reference_forward(x, params, num_classes))

    # default: auto row tile (whole image here -> one grid step per image)
    fwd = jax.jit(lambda xx, pp: effnet_forward(xx, pp, num_classes))
    out = jax.block_until_ready(fwd(x, prep))
    assert out.shape == (2, num_classes)
    assert bool(jnp.allclose(out, ref, rtol=1e-2, atol=1e-3)), (
        "max abs err = %f" % float(jnp.max(jnp.abs(out - ref))))

    # also exercise the multi-tile GAP accumulator, halo BlockSpec and the
    # pl.when-gated partial-tile masking (row_tile=3 does not divide ho=8)
    fwd_tiled = jax.jit(
        lambda xx, pp: effnet_forward(xx, pp, num_classes, row_tile=3))
    out_tiled = jax.block_until_ready(fwd_tiled(x, prep))
    assert bool(jnp.allclose(out_tiled, ref, rtol=1e-2, atol=1e-3)), (
        "max abs err (tiled) = %f" % float(jnp.max(jnp.abs(out_tiled - ref))))

    print("KERNEL_OK")
</pallas_src>

<mosaic_0001>
module attributes {stable_mosaic.version = 11 : i64} {
  func.func @_stem_gap_kernel(%arg0: i32, %arg1: i32, %arg2: memref<1x8x9x12xbf16, #tpu.memory_space<vmem>>, %arg3: memref<1x1x9x12xbf16, #tpu.memory_space<vmem>>, %arg4: memref<4x12x128xbf16, #tpu.memory_space<vmem>>, %arg5: memref<1x128xf32, #tpu.memory_space<vmem>>, %arg6: memref<1x1x128xf32, #tpu.memory_space<vmem>>) attributes {dimension_semantics = [#tpu.dimension_semantics<parallel>, #tpu.dimension_semantics<arbitrary>], iteration_bounds = array<i64: 2, 1>, scalar_prefetch = 0 : i64, scratch_operands = 0 : i64, tpu.core_type = #tpu.core_type<tc>, window_params = [{transform_indices = @transform_0, window_bounds = array<i64: 1, 8, 9, 12>}, {transform_indices = @transform_1, window_bounds = array<i64: 1, 1, 9, 12>}, {pipeline_mode = #tpu.pipeline_mode<synchronous>, transform_indices = @transform_2, window_bounds = array<i64: 4, 12, 128>}, {pipeline_mode = #tpu.pipeline_mode<synchronous>, transform_indices = @transform_3, window_bounds = array<i64: 1, 128>}, {transform_indices = @transform_4, window_bounds = array<i64: 1, 1, 128>}]} {
    %c0_i32 = arith.constant 0 : i32
    %0 = arith.cmpi eq, %arg1, %c0_i32 : i32
    %1 = arith.extui %0 : i1 to i32
    %c0_i32_0 = arith.constant 0 : i32
    %2 = arith.cmpi ne, %1, %c0_i32_0 : i32
    scf.if %2 {
      %cst_32 = arith.constant 0.000000e+00 : f32
      %48 = vector.broadcast %cst_32 : f32 to vector<1x1x128xf32>
      %c0_33 = arith.constant 0 : index
      %c0_34 = arith.constant 0 : index
      %c0_35 = arith.constant 0 : index
      %49 = vector.load %arg6[%c0_33, %c0_34, %c0_35] : memref<1x1x128xf32, #tpu.memory_space<vmem>>, vector<1x1x128xf32>
      tpu.vector_store %arg6[%c0_33, %c0_34, %c0_35], %48 {strides = array<i32>} : memref<1x1x128xf32, #tpu.memory_space<vmem>>, vector<1x1x128xf32>,
    } else {
    }
    %c0 = arith.constant 0 : index
    %c0_1 = arith.constant 0 : index
    %c0_2 = arith.constant 0 : index
    %c0_3 = arith.constant 0 : index
    %3 = vector.load %arg2[%c0, %c0_1, %c0_2, %c0_3] : memref<1x8x9x12xbf16, #tpu.memory_space<vmem>>, vector<1x8x9x12xbf16>
    %4 = vector.shape_cast %3 : vector<1x8x9x12xbf16> to vector<8x9x12xbf16>
    %c0_4 = arith.constant 0 : index
    %c0_5 = arith.constant 0 : index
    %c0_6 = arith.constant 0 : index
    %c0_7 = arith.constant 0 : index
    %5 = vector.load %arg3[%c0_4, %c0_5, %c0_6, %c0_7] : memref<1x1x9x12xbf16, #tpu.memory_space<vmem>>, vector<1x1x9x12xbf16>
    %6 = vector.shape_cast %5 : vector<1x1x9x12xbf16> to vector<1x9x12xbf16>
    %7 = tpu.concatenate %4, %6 in 0 : vector<8x9x12xbf16>, vector<1x9x12xbf16> -> vector<9x9x12xbf16>
    %8 = vector.extract_strided_slice %7 {offsets = [0, 0, 0], sizes = [8, 8, 12], strides = [1, 1, 1]} : vector<9x9x12xbf16> to vector<8x8x12xbf16>
    %9 = vector.shape_cast %8 : vector<8x8x12xbf16> to vector<64x12xbf16>
    %c0_8 = arith.constant 0 : index
    %c0_9 = arith.constant 0 : index
    %c0_10 = arith.constant 0 : index
    %10 = vector.load %arg4[%c0_8, %c0_9, %c0_10] : memref<4x12x128xbf16, #tpu.memory_space<vmem>>, vector<1x12x128xbf16>
    %11 = vector.shape_cast %10 : vector<1x12x128xbf16> to vector<12x128xbf16>
    %cst = arith.constant dense<0.000000e+00> : vector<64x128xf32>
    %12 = tpu.matmul %9, %11, %cst {dimension_numbers = #tpu.dot_dimension_numbers<[1], [0], [0], [1], [0, 0, 1, 1], [], []>} : vector<64x12xbf16>, vector<12x128xbf16>, vector<64x128xf32> -> vector<64x128xf32>
    %13 = vector.extract_strided_slice %7 {offsets = [0, 1, 0], sizes = [8, 8, 12], strides = [1, 1, 1]} : vector<9x9x12xbf16> to vector<8x8x12xbf16>
    %14 = vector.shape_cast %13 : vector<8x8x12xbf16> to vector<64x12xbf16>
    %c1 = arith.constant 1 : index
    %c0_11 = arith.constant 0 : index
    %c0_12 = arith.constant 0 : index
    %15 = vector.load %arg4[%c1, %c0_11, %c0_12] : memref<4x12x128xbf16, #tpu.memory_space<vmem>>, vector<1x12x128xbf16>
    %16 = vector.shape_cast %15 : vector<1x12x128xbf16> to vector<12x128xbf16>
    %cst_13 = arith.constant dense<0.000000e+00> : vector<64x128xf32>
    %17 = tpu.matmul %14, %16, %cst_13 {dimension_numbers = #tpu.dot_dimension_numbers<[1], [0], [0], [1], [0, 0, 1, 1], [], []>} : vector<64x12xbf16>, vector<12x128xbf16>, vector<64x128xf32> -> vector<64x128xf32>
    %18 = arith.addf %12, %17 : vector<64x128xf32>
    %19 = vector.extract_strided_slice %7 {offsets = [1, 0, 0], sizes = [8, 8, 12], strides = [1, 1, 1]} : vector<9x9x12xbf16> to vector<8x8x12xbf16>
    %20 = vector.shape_cast %19 : vector<8x8x12xbf16> to vector<64x12xbf16>
    %c2 = arith.constant 2 : index
    %c0_14 = arith.constant 0 : index
    %c0_15 = arith.constant 0 : index
    %21 = vector.load %arg4[%c2, %c0_14, %c0_15] : memref<4x12x128xbf16, #tpu.memory_space<vmem>>, vector<1x12x128xbf16>
    %22 = vector.shape_cast %21 : vector<1x12x128xbf16> to vector<12x128xbf16>
    %cst_16 = arith.constant dense<0.000000e+00> : vector<64x128xf32>
    %23 = tpu.matmul %20, %22, %cst_16 {dimension_numbers = #tpu.dot_dimension_numbers<[1], [0], [0], [1], [0, 0, 1, 1], [], []>} : vector<64x12xbf16>, vector<12x128xbf16>, vector<64x128xf32> -> vector<64x128xf32>
    %24 = arith.addf %18, %23 : vector<64x128xf32>
    %25 = vector.extract_strided_slice %7 {offsets = [1, 1, 0], sizes = [8, 8, 12], strides = [1, 1, 1]} : vector<9x9x12xbf16> to vector<8x8x12xbf16>
    %26 = vector.shape_cast %25 : vector<8x8x12xbf16> to vector<64x12xbf16>
    %c3 = arith.constant 3 : index
    %c0_17 = arith.constant 0 : index
    %c0_18 = arith.constant 0 : index
    %27 = vector.load %arg4[%c3, %c0_17, %c0_18] : memref<4x12x128xbf16, #tpu.memory_space<vmem>>, vector<1x12x128xbf16>
    %28 = vector.shape_cast %27 : vector<1x12x128xbf16> to vector<12x128xbf16>
    %cst_19 = arith.constant dense<0.000000e+00> : vector<64x128xf32>
    %29 = tpu.matmul %26, %28, %cst_19 {dimension_numbers = #tpu.dot_dimension_numbers<[1], [0], [0], [1], [0, 0, 1, 1], [], []>} : vector<64x12xbf16>, vector<12x128xbf16>, vector<64x128xf32> -> vector<64x128xf32>
    %30 = arith.addf %24, %29 : vector<64x128xf32>
    %c0_20 = arith.constant 0 : index
    %c0_21 = arith.constant 0 : index
    %31 = vector.load %arg5[%c0_20, %c0_21] : memref<1x128xf32, #tpu.memory_space<vmem>>, vector<1x128xf32>
    %32 = vector.broadcast %31 : vector<1x128xf32> to vector<64x128xf32>
    %33 = arith.addf %30, %32 : vector<64x128xf32>
    %34 = arith.negf %33 : vector<64x128xf32>
    %35 = math.exp %34 : vector<64x128xf32>
    %cst_22 = arith.constant 1.000000e+00 : f32
    %36 = vector.broadcast %cst_22 : f32 to vector<64x128xf32>
    %37 = arith.addf %36, %35 : vector<64x128xf32>
    %38 = arith.divf %36, %37 : vector<64x128xf32>
    %39 = arith.mulf %33, %38 : vector<64x128xf32>
    %c0_23 = arith.constant 0 : index
    %c0_24 = arith.constant 0 : index
    %c0_25 = arith.constant 0 : index
    %40 = vector.load %arg6[%c0_23, %c0_24, %c0_25] : memref<1x1x128xf32, #tpu.memory_space<vmem>>, vector<1x1x128xf32>
    %cst_26 = arith.constant dense<0.000000e+00> : vector<128xf32>
    %41 = vector.multi_reduction <add>, %39, %cst_26 [0] : vector<64x128xf32> to vector<128xf32>
    %42 = vector.shape_cast %41 : vector<128xf32> to vector<1x1x128xf32>
    %43 = arith.addf %40, %42 : vector<1x1x128xf32>
    %c0_27 = arith.constant 0 : index
    %c0_28 = arith.constant 0 : index
    %c0_29 = arith.constant 0 : index
    %44 = vector.load %arg6[%c0_27, %c0_28, %c0_29] : memref<1x1x128xf32, #tpu.memory_space<vmem>>, vector<1x1x128xf32>
    tpu.vector_store %arg6[%c0_27, %c0_28, %c0_29], %43 {strides = array<i32>} : memref<1x1x128xf32, #tpu.memory_space<vmem>>, vector<1x1x128xf32>,
    %c0_i32_30 = arith.constant 0 : i32
    %45 = arith.cmpi eq, %arg1, %c0_i32_30 : i32
    %46 = arith.extui %45 : i1 to i32
    %c0_i32_31 = arith.constant 0 : i32
    %47 = arith.cmpi ne, %46, %c0_i32_31 : i32
    scf.if %47 {
      %c0_32 = arith.constant 0 : index
      %c0_33 = arith.constant 0 : index
      %c0_34 = arith.constant 0 : index
      %48 = vector.load %arg6[%c0_32, %c0_33, %c0_34] : memref<1x1x128xf32, #tpu.memory_space<vmem>>, vector<1x1x128xf32>
      %cst_35 = arith.constant 1.562500e-02 : f32
      %49 = vector.broadcast %cst_35 : f32 to vector<1x1x128xf32>
      %50 = arith.mulf %48, %49 : vector<1x1x128xf32>
      %c0_36 = arith.constant 0 : index
      %c0_37 = arith.constant 0 : index
      %c0_38 = arith.constant 0 : index
      %51 = vector.load %arg6[%c0_36, %c0_37, %c0_38] : memref<1x1x128xf32, #tpu.memory_space<vmem>>, vector<1x1x128xf32>
      tpu.vector_store %arg6[%c0_36, %c0_37, %c0_38], %50 {strides = array<i32>} : memref<1x1x128xf32, #tpu.memory_space<vmem>>, vector<1x1x128xf32>,
    } else {
    }
    return
  }
  func.func @transform_0(%arg0: i32, %arg1: i32) -> (i32, i32, i32, i32) {
    %c0_i32 = arith.constant 0 : i32
    %c0_i32_0 = arith.constant 0 : i32
    %c0_i32_1 = arith.constant 0 : i32
    return %arg0, %arg1, %c0_i32, %c0_i32_0 : i32, i32, i32, i32
  }
  func.func @transform_1(%arg0: i32, %arg1: i32) -> (i32, i32, i32, i32) {
    %c1_i32 = arith.constant 1 : i32
    %0 = arith.addi %arg1, %c1_i32 : i32
    %c8_i32 = arith.constant 8 : i32
    %1 = arith.muli %0, %c8_i32 : i32
    %c0_i32 = arith.constant 0 : i32
    %c0_i32_0 = arith.constant 0 : i32
    %c0_i32_1 = arith.constant 0 : i32
    return %arg0, %1, %c0_i32, %c0_i32_0 : i32, i32, i32, i32
  }
  func.func @transform_2(%arg0: i32, %arg1: i32) -> (i32, i32, i32) {
    %c0_i32 = arith.constant 0 : i32
    %c0_i32_0 = arith.constant 0 : i32
    %c0_i32_1 = arith.constant 0 : i32
    %c0_i32_2 = arith.constant 0 : i32
    return %c0_i32, %c0_i32_0, %c0_i32_1 : i32, i32, i32
  }
  func.func @transform_3(%arg0: i32, %arg1: i32) -> (i32, i32) {
    %c0_i32 = arith.constant 0 : i32
    %c0_i32_0 = arith.constant 0 : i32
    %c0_i32_1 = arith.constant 0 : i32
    return %c0_i32, %c0_i32_0 : i32, i32
  }
  func.func @transform_4(%arg0: i32, %arg1: i32) -> (i32, i32, i32) {
    %c0_i32 = arith.constant 0 : i32
    %c0_i32_0 = arith.constant 0 : i32
    %c0_i32_1 = arith.constant 0 : i32
    return %arg0, %c0_i32, %c0_i32_0 : i32, i32, i32
  }
}

module attributes {stable_mosaic.version = 11 : i64} {
  func.func @_head_kernel(%arg0: memref<2xf32, #tpu.memory_space<smem>>, %arg1: memref<8x128xf32, #tpu.memory_space<vmem>>, %arg2: memref<128x128xf32, #tpu.memory_space<vmem>>, %arg3: memref<1x128xf32, #tpu.memory_space<vmem>>, %arg4: memref<128x256xf32, #tpu.memory_space<vmem>>, %arg5: memref<1x256xf32, #tpu.memory_space<vmem>>, %arg6: memref<256x128xf32, #tpu.memory_space<vmem>>, %arg7: memref<1x128xf32, #tpu.memory_space<vmem>>, %arg8: memref<128x128xf32, #tpu.memory_space<vmem>>, %arg9: memref<1x128xf32, #tpu.memory_space<vmem>>, %arg10: memref<8x128xf32, #tpu.memory_space<vmem>>) attributes {dimension_semantics = [], scalar_prefetch = 0 : i64, scratch_operands = 0 : i64, tpu.core_type = #tpu.core_type<tc>} {
    %c0 = arith.constant 0 : index
    %c0_0 = arith.constant 0 : index
    %0 = vector.load %arg1[%c0, %c0_0] : memref<8x128xf32, #tpu.memory_space<vmem>>, vector<8x128xf32>
    %c0_1 = arith.constant 0 : index
    %c0_2 = arith.constant 0 : index
    %1 = vector.load %arg2[%c0_1, %c0_2] : memref<128x128xf32, #tpu.memory_space<vmem>>, vector<128x128xf32>
    %cst = arith.constant dense<0.000000e+00> : vector<8x128xf32>
    %2 = tpu.matmul %0, %1, %cst {dimension_numbers = #tpu.dot_dimension_numbers<[1], [0], [0], [1], [0, 0, 1, 1], [], []>} : vector<8x128xf32>, vector<128x128xf32>, vector<8x128xf32> -> vector<8x128xf32>
    %c0_3 = arith.constant 0 : index
    %c0_4 = arith.constant 0 : index
    %3 = vector.load %arg3[%c0_3, %c0_4] : memref<1x128xf32, #tpu.memory_space<vmem>>, vector<1x128xf32>
    %4 = vector.broadcast %3 : vector<1x128xf32> to vector<8x128xf32>
    %5 = arith.addf %2, %4 : vector<8x128xf32>
    %c0_5 = arith.constant 0 : index
    %c0_6 = arith.constant 0 : index
    %6 = vector.load %arg4[%c0_5, %c0_6] : memref<128x256xf32, #tpu.memory_space<vmem>>, vector<128x256xf32>
    %cst_7 = arith.constant dense<0.000000e+00> : vector<8x256xf32>
    %7 = tpu.matmul %5, %6, %cst_7 {dimension_numbers = #tpu.dot_dimension_numbers<[1], [0], [0], [1], [0, 0, 1, 1], [], []>} : vector<8x128xf32>, vector<128x256xf32>, vector<8x256xf32> -> vector<8x256xf32>
    %c0_8 = arith.constant 0 : index
    %c0_9 = arith.constant 0 : index
    %8 = vector.load %arg5[%c0_8, %c0_9] : memref<1x256xf32, #tpu.memory_space<vmem>>, vector<1x256xf32>
    %9 = vector.broadcast %8 : vector<1x256xf32> to vector<8x256xf32>
    %10 = arith.addf %7, %9 : vector<8x256xf32>
    %cst_10 = arith.constant 0.000000e+00 : f32
    %11 = vector.broadcast %cst_10 : f32 to vector<8x256xf32>
    %12 = arith.cmpf oge, %10, %11 : vector<8x256xf32>
    %c0_11 = arith.constant 0 : index
    %13 = memref.load %arg0[%c0_11] : memref<2xf32, #tpu.memory_space<smem>>
    %14 = vector.broadcast %13 : f32 to vector<8x256xf32>
    %15 = arith.mulf %14, %10 : vector<8x256xf32>
    %16 = arith.select %12, %10, %15 : vector<8x256xi1>, vector<8x256xf32>
    %c0_12 = arith.constant 0 : index
    %c0_13 = arith.constant 0 : index
    %17 = vector.load %arg6[%c0_12, %c0_13] : memref<256x128xf32, #tpu.memory_space<vmem>>, vector<256x128xf32>
    %cst_14 = arith.constant dense<0.000000e+00> : vector<8x128xf32>
    %18 = tpu.matmul %16, %17, %cst_14 {dimension_numbers = #tpu.dot_dimension_numbers<[1], [0], [0], [1], [0, 0, 1, 1], [], []>} : vector<8x256xf32>, vector<256x128xf32>, vector<8x128xf32> -> vector<8x128xf32>
    %c0_15 = arith.constant 0 : index
    %c0_16 = arith.constant 0 : index
    %19 = vector.load %arg7[%c0_15, %c0_16] : memref<1x128xf32, #tpu.memory_space<vmem>>, vector<1x128xf32>
    %20 = vector.broadcast %19 : vector<1x128xf32> to vector<8x128xf32>
    %21 = arith.addf %18, %20 : vector<8x128xf32>
    %cst_17 = arith.constant 0.000000e+00 : f32
    %22 = vector.broadcast %cst_17 : f32 to vector<8x128xf32>
    %23 = arith.cmpf oge, %21, %22 : vector<8x128xf32>
    %c1 = arith.constant 1 : index
    %24 = memref.load %arg0[%c1] : memref<2xf32, #tpu.memory_space<smem>>
    %25 = vector.broadcast %24 : f32 to vector<8x128xf32>
    %26 = arith.mulf %25, %21 : vector<8x128xf32>
    %27 = arith.select %23, %21, %26 : vector<8x128xi1>, vector<8x128xf32>
    %c0_18 = arith.constant 0 : index
    %c0_19 = arith.constant 0 : index
    %28 = vector.load %arg8[%c0_18, %c0_19] : memref<128x128xf32, #tpu.memory_space<vmem>>, vector<128x128xf32>
    %cst_20 = arith.constant dense<0.000000e+00> : vector<8x128xf32>
    %29 = tpu.matmul %27, %28, %cst_20 {dimension_numbers = #tpu.dot_dimension_numbers<[1], [0], [0], [1], [0, 0, 1, 1], [], []>} : vector<8x128xf32>, vector<128x128xf32>, vector<8x128xf32> -> vector<8x128xf32>
    %c0_21 = arith.constant 0 : index
    %c0_22 = arith.constant 0 : index
    %30 = vector.load %arg9[%c0_21, %c0_22] : memref<1x128xf32, #tpu.memory_space<vmem>>, vector<1x128xf32>
    %31 = vector.broadcast %30 : vector<1x128xf32> to vector<8x128xf32>
    %32 = arith.addf %29, %31 : vector<8x128xf32>
    %c0_23 = arith.constant 0 : index
    %c0_24 = arith.constant 0 : index
    %33 = vector.load %arg10[%c0_23, %c0_24] : memref<8x128xf32, #tpu.memory_space<vmem>>, vector<8x128xf32>
    tpu.vector_store %arg10[%c0_23, %c0_24], %32 {strides = array<i32>} : memref<8x128xf32, #tpu.memory_space<vmem>>, vector<8x128xf32>,
    return
  }
}

</mosaic_0001>

<bundles_post_ra>
// kernel: _lambda_.2
= control target key start
LH: loop header
LB: loop body
LE: loop exit
PB: predicated region body
PF: predicated region fallthrough
CT: control target
= control target key end

     0   :  { %s1170_s15 = smov 0   ;;  %s1172_s16 = smov 0   ;;  %s1521_s0 = inlined_call_operand.vmem [shape: bf16[2,9,9,12], index: 0, kind: input, shape index: {}, may-alias: {0,1}]   ;;  %s1522_s1 = inlined_call_operand.vmem [shape: bf16[2,9,9,12], index: 1, kind: input, shape index: {}, may-alias: {0,1}]   ;;  %s1523_s2 = inlined_call_operand.vmem [shape: bf16[4,12,128], index: 2, kind: input, shape index: {}]   ;;  %s1524_s3 = inlined_call_operand.vmem [shape: f32[1,128], index: 3, kind: input, shape index: {}]   ;;  %s1525_s4 = inlined_call_operand.vmem [shape: f32[2,1,128], index: 4, kind: output, shape index: {}]  }
   0x1   :  { %s1174_s17 = smov 0  }
   0x2 LB: > { %s26_s18 = sadd.s32 1, %s1138_s16  ;;  %p1002_p0 = scmp.ge.s32.totalorder %s1142_s17, 1  ;;  %s1142_s17 = sphi %s1174_s17, %s14_s17   ;;  %s1138_s16 = sphi %s1172_s16, %s1547_s16   ;;  %s1134_s15 = sphi %s1170_s15, %s1546_s15  }
   0x3   : > { %p28_p1 = scmp.ge.s32.totalorder %s26_s18, 2  ;;  %p216_p2 = scmp.lt.s32.totalorder %s1142_s17, 3 }
   0x5   : > { %s1549_s18 = smov (%p28_p1, %s26_s18), 0  ;;  %p217_p3 = pnand %p1002_p0, %p216_p2 }
   0x6   : > { %p267_p4 = scmp.lt.s32.totalorder (!%p217_p3), %s1134_s15, 1 }
   0x7   : > { %220 = sbr.rel (%p217_p3) target bundleno = 282 (0x11a), region = 36 }
   0xc   : > { %vm472_vm0 = vcmask 1045504   ;;  %v1027_v0 = vld [vmem:[%s1523_s2 + $0x10] sm:$0xf]  ;;  %v1057_v1 = vld [vmem:[%s1523_s2 + $0x10] sm:$0x30]  ;;  %s1551_s15 = smov (!%p267_p4, %s1134_s15), 1 }
   0xd   : > { %v1028_v2 = vor.u32 %v1057_v1, %v1027_v0  ;;  %v1017_v3 = vld [vmem:[%s1523_s2] sm:$0xf]  ;;  %v1055_v4 = vld [vmem:[%s1523_s2] sm:$0x30]  ;;  %v1009_v6 = vld [vmem:[%s1523_s2 + $0x8] sm:$0xf]  ;;  %s1364_s25 = scalar_lea.vmem %s1525_s4, %s1551_s15 }
   0xe   : > { %v1018_v5 = vor.u32 %v1055_v4, %v1017_v3  ;;  %v1056_v7 = vld [vmem:[%s1523_s2 + $0x8] sm:$0x30]  ;;  %v1037_v10 = vld [vmem:[%s1523_s2 + $0x18] sm:$0xf]  ;;  %v1058_v11 = vld [vmem:[%s1523_s2 + $0x18] sm:$0x30] }
   0xf   : > { %v601_v8 = vsel %vm472_vm0, %v1028_v2, 0  ;;  %v1010_v9 = vor.u32 %v1056_v7, %v1009_v6  ;;  %s1059_s9 = smul.u32 72, %s1551_s15  ;;  %v1038_v13 = vor.u32 %v1058_v11, %v1037_v10  ;;  %vm459_vm1 = vcmask 97280  }
  0x10   : > { %610 = vmatpush.bf16.msra.mxu2 %v601_v8  ;;  %v543_v12 = vsel %vm472_vm0, %v1018_v5, 0  ;;  %vm324_vm2 = vsmask.f32 3328  ;;  %vm325_vm3 = vsmask.f32 7440 }
  0x11   : > { %552 = vmatpush.bf16.msra.mxu1 %v543_v12  ;;  %v474_v14 = vsel %vm472_vm0, %v1010_v9, 0  ;;  %s1223_s12 = scalar_lea.vmem %s1521_s0, %s1059_s9  ;;  %v680_v15 = vsel %vm472_vm0, %v1038_v13, 0  ;;  %vm1243_vm4 = vmor %vm324_vm2, %vm325_vm3  ;;  %s1054_s13 = sadd.s32 64, %s1059_s9 }
  0x12   : > { %483 = vmatpush.bf16.msra.mxu0 %v474_v14  ;;  %v306_v16 = vld [vmem:[%s1223_s12 + $0x8] sm:$0xf]  ;;  %v1228_v17 = vld [vmem:[%s1223_s12 + $0x10] sm:$0xf]  ;;  %v304_v18 = vld [vmem:[%s1223_s12] sm:$0xf]  ;;  %689 = vmatpush.bf16.msra.mxu3 %v680_v15  ;;  %s292_s20 = scalar_lea.vmem %s1522_s1, %s1054_s13 }
  0x13   : > { %v342_v19 = vshrl.u32 %v306_v16, 16  ;;  %v345_v20 = vshll.u32 %v306_v16, 16  ;;  %v356_v21 = vshrl.u32 %v1228_v17, 16  ;;  %v359_v22 = vshll.u32 %v1228_v17, 16  ;;  %v305_v23 = vld [vmem:[%s1223_s12 + $0x4] sm:$0x1] }
  0x14   : > { %v514_v24 = vunpack.c.l.b16 %v306_v16  ;;  %v515_v25 = vunpack.c.l.b16 %v1228_v17  ;;  %v328_v26 = vshrl.u32 %v304_v18, 16  ;;  %v331_v27 = vshll.u32 %v304_v18, 16  ;;  %v307_v28 = vld [vmem:[%s1223_s12 + $0xc] sm:$0x1]  ;;  %v309_v29 = vld [vmem:[%s1223_s12 + $0x14] sm:$0x1] }
  0x15   : > { %v344_v30 = vrot.slane %v342_v19, 4  ;;  %v347_v31 = vrot.slane %v345_v20, 5  ;;  %v358_v32 = vrot.slane %v356_v21, 4  ;;  %v361_v33 = vrot.slane %v359_v22, 5  ;;  %v310_v34 = vld [vmem:[%s1223_s12 + $0x18] sm:$0xf] }
  0x16   : > { %v579_v35 = vpack.c.b16 %v515_v25, %v514_v24  ;;  %v330_v36 = vrot.slane %v328_v26, 4  ;;  %v333_v37 = vrot.slane %v331_v27, 5  ;;  %v513_v38 = vunpack.c.l.b16 %v304_v18  ;;  %v1248_v47 = vld [vmem:[%s1223_s12 + $0x20] sm:$0xf]  ;;  %v311_v60 = vld [vmem:[%s1223_s12 + $0x1c] sm:$0x1] }
  0x17   : > { %v337_v39 = vshll.u32 %v305_v23, 16  ;;  %v348_v40 = vor.u32 %v347_v31, %v344_v30  ;;  %v351_v41 = vshll.u32 %v307_v28, 16  ;;  %v362_v42 = vor.u32 %v361_v33, %v358_v32  ;;  %v313_v1 = vld [vmem:[%s1223_s12 + $0x24] sm:$0x1]  ;;  %v314_v19 = vld [vmem:[%s1223_s12 + $0x28] sm:$0xf] }
  0x18   : > { %1029 = vmatmul.msk.bf16.vlgmr.msra.gmra.mxu2 %vm459_vm1, %v579_v35  ;;  %v521_v43 = vpack.c.b16 %v514_v24, %v513_v38  ;;  %v334_v45 = vor.u32 %v333_v37, %v330_v36  ;;  %v365_v46 = vshll.u32 %v309_v29, 16  ;;  %v370_v48 = vshrl.u32 %v310_v34, 16  ;;  %v1266_v20 = vld [vmem:[%s1223_s12 + $0x30] sm:$0xf]  ;;  %v317_v35 = vld [vmem:[%s1223_s12 + $0x34] sm:$0x1] }
  0x19   : > { %v339_v49 = vrot.slane %v337_v39, 5  ;;  %v349_v50 = vrot.slane %v348_v40, 4  ;;  %v353_v51 = vrot.slane %v351_v41, 5  ;;  %v363_v52 = vrot.slane %v362_v42, 4 }
  0x1a   : > { %1019 = vmatmul.msk.bf16.vlgmr.msra.gmra.mxu1 %vm459_vm1, %v521_v43  ;;  %v335_v53 = vrot.slane %v334_v45, 4  ;;  %v367_v54 = vrot.slane %v365_v46, 5  ;;  %v372_v55 = vrot.slane %v370_v48, 4  ;;  %v373_v56 = vshll.u32 %v310_v34, 16 }
  0x1b   : > { %v354_v57 = vsel %vm1243_vm4, %v349_v50, %v353_v51  ;;  %v384_v58 = vshrl.u32 %v1248_v47, 16  ;;  %v387_v59 = vshll.u32 %v1248_v47, 16  ;;  %v379_v7 = vshll.u32 %v311_v60, 16  ;;  %v320_v50 = vld [vmem:[%s292_s20] sm:$0xf] }
  0x1c   : > { %v340_v61 = vsel %vm1243_vm4, %v335_v53, %v339_v49  ;;  %v443_v62 = vunpack.c.l.b16 %v354_v57  ;;  %v368_v63 = vsel %vm1243_vm4, %v363_v52, %v367_v54  ;;  %v375_v0 = vrot.slane %v373_v56, 5  ;;  %v318_v49 = vld [vmem:[%s1223_s12 + $0x38] sm:$0xf] }
  0x1d   : > { %v442_v2 = vunpack.c.l.b16 %v340_v61  ;;  %v444_v3 = vunpack.c.l.b16 %v368_v63  ;;  %v386_v4 = vrot.slane %v384_v58, 4  ;;  %v389_v5 = vrot.slane %v387_v59, 5 }
  0x1e   : > { %v376_v6 = vor.u32 %v375_v0, %v372_v55  ;;  %v393_v11 = vshll.u32 %v313_v1, 16  ;;  %v516_v12 = vunpack.c.l.b16 %v310_v34  ;;  %v517_v13 = vunpack.c.l.b16 %v1248_v47  ;;  %v315_v34 = vld [vmem:[%s1223_s12 + $0x2c] sm:$0x1]  ;;  %v321_v1 = vld [vmem:[%s292_s20 + $0x4] sm:$0x1] }
  0x1f   : > { %v450_v8 = vpack.c.b16 %v443_v62, %v442_v2  ;;  %v658_v9 = vpack.c.b16 %v444_v3, %v443_v62  ;;  %v390_v10 = vor.u32 %v389_v5, %v386_v4  ;;  %v381_v15 = vrot.slane %v379_v7, 5  ;;  %v319_v2 = vld [vmem:[%s1223_s12 + $0x3c] sm:$0x1] }
  0x20   : > { %v377_v14 = vrot.slane %v376_v6, 4  ;;  %v395_v18 = vrot.slane %v393_v11, 5  ;;  %v580_v21 = vpack.c.b16 %v517_v13, %v516_v12  ;;  %v522_v22 = vpack.c.b16 %v516_v12, %v515_v25 }
  0x21   : > { %1011 = vmatmul.msk.bf16.vlgmr.msra.gmra.mxu0 %vm459_vm1, %v450_v8  ;;  %1039 = vmatmul.msk.bf16.vlgmr.msra.gmra.mxu3 %vm459_vm1, %v658_v9  ;;  %v391_v16 = vrot.slane %v390_v10, 4  ;;  %v398_v23 = vshrl.u32 %v314_v19, 16  ;;  %v401_v24 = vshll.u32 %v314_v19, 16  ;;  %v412_v28 = vshrl.u32 %v1266_v20, 16 }
  0x22   : > { %v382_v26 = vsel %vm1243_vm4, %v377_v14, %v381_v15  ;;  %v415_v29 = vshll.u32 %v1266_v20, 16  ;;  %v407_v39 = vshll.u32 %v315_v34, 16  ;;  %v421_v41 = vshll.u32 %v317_v35, 16 }
  0x23   : > { %v396_v27 = vsel %vm1243_vm4, %v391_v16, %v395_v18  ;;  %v445_v30 = vunpack.c.l.b16 %v382_v26  ;;  %v400_v25 = vrot.slane %v398_v23, 4  ;;  %v403_v31 = vrot.slane %v401_v24, 5 }
  0x24   : > { %v446_v17 = vunpack.c.l.b16 %v396_v27  ;;  %v414_v32 = vrot.slane %v412_v28, 4  ;;  %v417_v33 = vrot.slane %v415_v29, 5  ;;  %v518_v42 = vunpack.c.l.b16 %v314_v19 }
  0x25   : > { %v451_v36 = vpack.c.b16 %v445_v30, %v444_v3  ;;  %v404_v38 = vor.u32 %v403_v31, %v400_v25  ;;  %v519_v43 = vunpack.c.l.b16 %v1266_v20  ;;  %v409_v46 = vrot.slane %v407_v39, 5 }
  0x26   : > { %v659_v37 = vpack.c.b16 %v446_v17, %v445_v30  ;;  %v418_v40 = vor.u32 %v417_v33, %v414_v32  ;;  %v423_v48 = vrot.slane %v421_v41, 5  ;;  %v523_v52 = vpack.c.b16 %v518_v42, %v517_v13 }
  0x27   : > { %v405_v45 = vrot.slane %v404_v38, 4  ;;  %v581_v51 = vpack.c.b16 %v519_v43, %v518_v42  ;;  %v426_v53 = vshrl.u32 %v318_v49, 16  ;;  %v429_v54 = vshll.u32 %v318_v49, 16 }
  0x28   : > { %1030 = vmatmul.msk.bf16.gmra.mxu2 %vm459_vm1, %v580_v21  ;;  %v419_v47 = vrot.slane %v418_v40, 4  ;;  %v641_v57 = vshrl.u32 %v320_v50, 16  ;;  %v644_v58 = vshll.u32 %v320_v50, 16  ;;  %v650_v5 = vshll.u32 %v321_v1, 16 }
  0x29   : > { %v410_v55 = vsel %vm1243_vm4, %v405_v45, %v409_v46  ;;  %v428_v61 = vrot.slane %v426_v53, 4  ;;  %v431_v62 = vrot.slane %v429_v54, 5  ;;  %v435_v7 = vshll.u32 %v319_v2, 16 }
  0x2a   : > { %1020 = vmatmul.msk.bf16.gmra.mxu1 %vm459_vm1, %v522_v22  ;;  %v424_v56 = vsel %vm1243_vm4, %v419_v47, %v423_v48  ;;  %v447_v59 = vunpack.c.l.b16 %v410_v55  ;;  %v643_v63 = vrot.slane %v641_v57, 4  ;;  %v646_v0 = vrot.slane %v644_v58, 5 }
  0x2b   : > { %v448_v60 = vunpack.c.l.b16 %v424_v56  ;;  %v432_v6 = vor.u32 %v431_v62, %v428_v61  ;;  %v520_v9 = vunpack.c.l.b16 %v318_v49  ;;  %v578_v10 = vunpack.c.l.b16 %v320_v50 }
  0x2c   : > { %v452_v3 = vpack.c.b16 %v447_v59, %v446_v17  ;;  %v647_v8 = vor.u32 %v646_v0, %v643_v63  ;;  %v437_v12 = vrot.slane %v435_v7, 5  ;;  %v652_v14 = vrot.slane %v650_v5, 5 }
  0x2d   : > { %v660_v4 = vpack.c.b16 %v448_v60, %v447_v59  ;;  %v433_v11 = vrot.slane %v432_v6, 4  ;;  %v582_v15 = vpack.c.b16 %v578_v10, %v520_v9  ;;  %v524_v16 = vpack.c.b16 %v520_v9, %v519_v43 }
  0x2e   : > { %v648_v13 = vrot.slane %v647_v8, 4 }
  0x2f   : > { %v438_v18 = vsel %vm1243_vm4, %v433_v11, %v437_v12 }
  0x30   : > { %v653_v19 = vsel %vm1243_vm4, %v648_v13, %v652_v14  ;;  %v449_v20 = vunpack.c.l.b16 %v438_v18 }
  0x31   : > { %1012 = vmatmul.msk.bf16.gmra.mxu0 %vm459_vm1, %v451_v36  ;;  %1040 = vmatmul.msk.bf16.gmra.mxu3 %vm459_vm1, %v659_v37  ;;  %v657_v21 = vunpack.c.l.b16 %v653_v19  ;;  %v1309_v37 = vld [vmem:[%s1524_s3] ss:$0 sm:$0xff] }
  0x32   : > { %v453_v22 = vpack.c.b16 %v449_v20, %v448_v60 }
  0x33   : > { %v661_v23 = vpack.c.b16 %v657_v21, %v449_v20 }
  0x38   : > { %1031 = vmatmul.msk.bf16.gmra.mxu2 %vm459_vm1, %v581_v51 }
  0x3a   : > { %1021 = vmatmul.msk.bf16.gmra.mxu1 %vm459_vm1, %v523_v52 }
  0x41   : > { %1013 = vmatmul.msk.bf16.gmra.mxu0 %vm459_vm1, %v452_v3  ;;  %1041 = vmatmul.msk.bf16.gmra.mxu3 %vm459_vm1, %v660_v4 }
  0x48   : > { %1032 = vmatmul.msk.bf16.gmra.mxu2 %vm459_vm1, %v582_v15 }
  0x4a   : > { %1022 = vmatmul.msk.bf16.gmra.mxu1 %vm459_vm1, %v524_v16 }
  0x51   : > { %1014 = vmatmul.msk.bf16.gmra.mxu0 %vm459_vm1, %v453_v22  ;;  %1042 = vmatmul.msk.bf16.gmra.mxu3 %vm459_vm1, %v661_v23 }
  0x97   : > { %v554_v24 = vpop.f32.mrf.mxu1 }
  0x9b   : > { %v612_v26 = vpop.f32.mrf.mxu2 }
  0x9e   : > { %v485_v27 = vpop.f32.mrf.mxu0 }
  0x9f   : > { %v556_v28 = vpop.f32.mrf.mxu1  ;;  %v555_v17 = vadd.f32 %v554_v24, %v485_v27 }
  0xa1   : > { %v632_v31 = vadd.f32 %v612_v26, %v555_v17 }
  0xa3   : > { %v614_v29 = vpop.f32.mrf.mxu2 }
  0xa4   : > { %v691_v30 = vpop.f32.mrf.mxu3 }
  0xa5   : > { %v711_v36 = vadd.f32 %v691_v30, %v632_v31 }
  0xa6   : > { %v487_v44 = vpop.f32.mrf.mxu0 }
  0xa7   : > { %v559_v25 = vpop.f32.mrf.mxu1  ;;  %v557_v34 = vadd.f32 %v556_v28, %v487_v44  ;;  %v1312_v41 = vadd.f32 %v1309_v37, %v711_v36 }
  0xa9   : > { %v633_v40 = vadd.f32 %v614_v29, %v557_v34  ;;  %v1043_v48 = vmul.f32 -1.442695, %v1312_v41 }
  0xab   : > { %v617_v32 = vpop.f32.mrf.mxu2  ;;  %1088 = vpow2.f32 %v1043_v48  ;;  %v1144_v48 = vmov 0.0  }
  0xac   : > { %v693_v33 = vpop.f32.mrf.mxu3  ;;  %303 = vst [vmem:[%s1364_s25] sm:$0x1] %v1144_v48 }
  0xad   : > { %v712_v45 = vadd.f32 %v693_v33, %v633_v40 }
  0xae   : > { %v490_v35 = vpop.f32.mrf.mxu0 }
  0xaf   : > { %v560_v38 = vadd.f32 %v559_v25, %v490_v35  ;;  %v561_v39 = vpop.f32.mrf.mxu1  ;;  %v1316_v51 = vadd.f32 %v1309_v37, %v712_v45 }
  0xb1   : > { %v634_v43 = vadd.f32 %v617_v32, %v560_v38  ;;  %v1044_v55 = vmul.f32 -1.442695, %v1316_v51  ;;  %v1089_v63 = vpop.eup %1088 }
  0xb2   : > { %v1327_v3 = vadd.f32 1.0, %v1089_v63 }
  0xb3   : > { %v619_v42 = vpop.f32.mrf.mxu2  ;;  %1090 = vpow2.f32 %v1044_v55 }
  0xb4   : > { %v696_v46 = vpop.f32.mrf.mxu3  ;;  %vm768_vm6 = vweird.f32 %v1327_v3 }
  0xb5   : > { %v713_v49 = vadd.f32 %v696_v46, %v634_v43 }
  0xb6   : > { %v492_v47 = vpop.f32.mrf.mxu0 }
  0xb7   : > { %v562_v50 = vadd.f32 %v561_v39, %v492_v47  ;;  %v564_v52 = vpop.f32.mrf.mxu1  ;;  %v1319_v53 = vadd.f32 %v1309_v37, %v713_v49 }
  0xb9   : > { %v635_v54 = vadd.f32 %v619_v42, %v562_v50  ;;  %v1045_v60 = vmul.f32 -1.442695, %v1319_v53  ;;  %v1091_v6 = vpop.eup %1090 }
  0xba   : > { %v1333_v12 = vadd.f32 1.0, %v1091_v6 }
  0xbb   : > { %v622_v56 = vpop.f32.mrf.mxu2  ;;  %1092 = vpow2.f32 %v1045_v60 }
  0xbc   : > { %v698_v57 = vpop.f32.mrf.mxu3  ;;  %vm783_vm9 = vweird.f32 %v1333_v12 }
  0xbd   : > { %v714_v58 = vadd.f32 %v698_v57, %v635_v54  ;;  %v772_v57 = vand.u32 2147483647, %v1327_v3 }
  0xbe   : > { %v495_v59 = vpop.f32.mrf.mxu0 }
  0xbf   : > { %v1324_v61 = vadd.f32 %v1309_v37, %v714_v58  ;;  %v565_v62 = vadd.f32 %v564_v52, %v495_v59  ;;  %v566_v2 = vpop.f32.mrf.mxu1  ;;  %v774_v58 = vand.u32 2147483648, %v1327_v3  ;;  %vm1398_vm8 = vcmp.eq.f32.partialorder %v772_v57, 8.507059e+37 }
  0xc1   : > { %v1046_v0 = vmul.f32 -1.442695, %v1324_v61  ;;  %v636_v1 = vadd.f32 %v622_v56, %v565_v62  ;;  %v1093_v11 = vpop.eup %1092 }
  0xc2   : > { %v1336_v16 = vadd.f32 1.0, %v1093_v11 }
  0xc3   : > { %1094 = vpow2.f32 %v1046_v0  ;;  %v624_v7 = vpop.f32.mrf.mxu2 }
  0xc4   : > { %v701_v4 = vpop.f32.mrf.mxu3  ;;  %1096 = vrcp.f32 %v1327_v3  ;;  %vm798_vm13 = vweird.f32 %v1336_v16 }
  0xc5   : > { %v715_v5 = vadd.f32 %v701_v4, %v636_v1 }
  0xc6   : > { %v497_v8 = vpop.f32.mrf.mxu0 }
  0xc7   : > { %v1330_v9 = vadd.f32 %v1309_v37, %v715_v5  ;;  %v567_v10 = vadd.f32 %v566_v2, %v497_v8  ;;  %v569_v19 = vpop.f32.mrf.mxu1 }
  0xc9   : > { %v1047_v13 = vmul.f32 -1.442695, %v1330_v9  ;;  %v1095_v14 = vpop.eup %1094  ;;  %v637_v15 = vadd.f32 %v624_v7, %v567_v10  ;;  %v775_v7 = vor.u32 1.1754944e-38, %v774_v58 }
  0xca   : > { %v1339_v21 = vpop.eup %1096  ;;  %v1341_v22 = vadd.f32 1.0, %v1095_v14  ;;  %v787_v14 = vand.u32 2147483647, %v1333_v12 }
  0xcb   : > { %1098 = vpow2.f32 %v1047_v13  ;;  %v627_v26 = vpop.f32.mrf.mxu2  ;;  %v764_v29 = vmul.f32 %v1339_v21, %v1327_v3  ;;  %vm769_vm5 = vweird.f32 %v1339_v21 }
  0xcc   : > { %v703_v18 = vpop.f32.mrf.mxu3  ;;  %1100 = vrcp.f32 %v1333_v12  ;;  %vm1394_vm7 = vmor %vm768_vm6, %vm769_vm5  ;;  %vm788_vm15 = vcmp.eq.f32.partialorder %v787_v14, 8.507059e+37  ;;  %vm813_vm2 = vweird.f32 %v1341_v22 }
  0xcd   : > { %v716_v20 = vadd.f32 %v703_v18, %v637_v15  ;;  %1102 = vrcp.f32 %v1336_v16  ;;  %v765_v32 = vsub.f32 1.0, %v764_v29 }
  0xce   : > { %v500_v23 = vpop.f32.mrf.mxu0  ;;  %1104 = vrcp.f32 %v1341_v22 }
  0xcf   : > { %v1344_v24 = vadd.f32 %v1309_v37, %v716_v20  ;;  %v570_v27 = vadd.f32 %v569_v19, %v500_v23  ;;  %v571_v38 = vpop.f32.mrf.mxu1  ;;  %v766_v45 = vmul.f32 %v1339_v21, %v765_v32  ;;  %v789_v23 = vand.u32 2147483648, %v1333_v12 }
  0xd1   : > { %v1099_v28 = vpop.eup %1098  ;;  %v1048_v30 = vmul.f32 -1.442695, %v1344_v24  ;;  %v638_v17 = vadd.f32 %v627_v26, %v570_v27  ;;  %v767_v60 = vadd.f32 %v1339_v21, %v766_v45  ;;  %v802_v26 = vand.u32 2147483647, %v1336_v16 }
  0xd2   : > { %v1351_v44 = vadd.f32 1.0, %v1099_v28  ;;  %v1353_v25 = vpop.eup %1100  ;;  %v804_v28 = vand.u32 2147483648, %v1336_v16 }
  0xd3   : > { %1106 = vpow2.f32 %v1048_v30  ;;  %v1355_v34 = vpop.eup %1102  ;;  %v779_v35 = vmul.f32 %v1353_v25, %v1333_v12  ;;  %v629_v52 = vpop.f32.mrf.mxu2  ;;  %v771_v3 = vsel %vm1394_vm7, %v1339_v21, %v767_v60  ;;  %vm784_vm10 = vweird.f32 %v1353_v25 }
  0xd4   : > { %v706_v31 = vpop.f32.mrf.mxu3  ;;  %1108 = vrcp.f32 %v1351_v44  ;;  %v1369_v40 = vpop.eup %1104  ;;  %v794_v46 = vmul.f32 %v1355_v34, %v1336_v16  ;;  %v776_v21 = vsel %vm1398_vm8, %v775_v7, %v771_v3  ;;  %vm799_vm11 = vweird.f32 %v1355_v34  ;;  %vm1430_vm12 = vmor %vm783_vm9, %vm784_vm10 }
  0xd5   : > { %v717_v33 = vadd.f32 %v706_v31, %v638_v17  ;;  %v780_v49 = vsub.f32 1.0, %v779_v35  ;;  %v809_v54 = vmul.f32 %v1369_v40, %v1341_v22  ;;  %v817_v17 = vand.u32 2147483647, %v1341_v22  ;;  %vm1444_vm0 = vmor %vm798_vm13, %vm799_vm11 }
  0xd6   : > { %v502_v36 = vpop.f32.mrf.mxu0  ;;  %v795_v62 = vsub.f32 1.0, %v794_v46  ;;  %v819_v31 = vand.u32 2147483648, %v1341_v22  ;;  %vm814_vm14 = vweird.f32 %v1369_v40  ;;  %v883_v35 = vmul.f32 %v776_v21, %v1312_v41 }
  0xd7   : > { %v1367_v39 = vadd.f32 %v1309_v37, %v717_v33  ;;  %v572_v42 = vadd.f32 %v571_v38, %v502_v36  ;;  %v781_v0 = vmul.f32 %v1353_v25, %v780_v49  ;;  %v810_v1 = vsub.f32 1.0, %v809_v54  ;;  %vm1457_vm3 = vmor %vm813_vm2, %vm814_vm14 }
  0xd8   : > { %v796_v10 = vmul.f32 %v1355_v34, %v795_v62  ;;  %v790_v36 = vor.u32 1.1754944e-38, %v789_v23  ;;  %vm1448_vm1 = vcmp.eq.f32.partialorder %v802_v26, 8.507059e+37  ;;  %vm1461_vm4 = vcmp.eq.f32.partialorder %v817_v17, 8.507059e+37 }
  0xd9   : > { %v1107_v43 = vpop.eup %1106  ;;  %v1049_v47 = vmul.f32 -1.442695, %v1367_v39  ;;  %v639_v55 = vadd.f32 %v629_v52, %v572_v42  ;;  %v782_v13 = vadd.f32 %v1353_v25, %v781_v0  ;;  %v811_v18 = vmul.f32 %v1369_v40, %v810_v1 }
  0xda   : > { %v1376_v50 = vadd.f32 1.0, %v1107_v43  ;;  %v1380_v56 = vpop.eup %1108  ;;  %v797_v27 = vadd.f32 %v1355_v34, %v796_v10  ;;  %v805_v43 = vor.u32 1.1754944e-38, %v804_v28  ;;  %v820_v49 = vor.u32 1.1754944e-38, %v819_v31 }
  0xdb   : > { %1110 = vpow2.f32 %v1049_v47  ;;  %v824_v2 = vmul.f32 %v1380_v56, %v1351_v44  ;;  %v786_v32 = vsel %vm1430_vm12, %v1353_v25, %v782_v13  ;;  %v812_v33 = vadd.f32 %v1369_v40, %v811_v18 }
  0xdc   : > { %1112 = vrcp.f32 %v1376_v50  ;;  %v708_v59 = vpop.f32.mrf.mxu3  ;;  %v801_v25 = vsel %vm1444_vm0, %v1355_v34, %v797_v27  ;;  %v791_v46 = vsel %vm788_vm15, %v790_v36, %v786_v32  ;;  %vm829_vm5 = vweird.f32 %v1380_v56 }
  0xdd   : > { %v718_v63 = vadd.f32 %v708_v59, %v639_v55  ;;  %v825_v19 = vsub.f32 1.0, %v824_v2  ;;  %v816_v34 = vsel %vm1457_vm3, %v1369_v40, %v812_v33  ;;  %v806_v55 = vsel %vm1448_vm1, %v805_v43, %v801_v25  ;;  %v891_v43 = vld [vmem:[%s1364_s25] sm:$0x1] }
  0xde   : > { %v832_v57 = vand.u32 2147483647, %v1351_v44  ;;  %v834_v58 = vand.u32 2147483648, %v1351_v44  ;;  %vm828_vm6 = vweird.f32 %v1351_v44  ;;  %v884_v60 = vmul.f32 %v791_v46, %v1316_v51 }
  0xdf   : > { %v1392_v4 = vadd.f32 %v1309_v37, %v718_v63  ;;  %v826_v12 = vmul.f32 %v1380_v56, %v825_v19  ;;  %v821_v62 = vsel %vm1461_vm4, %v820_v49, %v816_v34  ;;  %vm1481_vm8 = vmor %vm828_vm6, %vm829_vm5  ;;  %vm843_vm9 = vweird.f32 %v1376_v50 }
  0xe0   : > { %v849_v0 = vand.u32 2147483648, %v1376_v50  ;;  %v847_v1 = vand.u32 2147483647, %v1376_v50  ;;  %v885_v51 = vmul.f32 %v806_v55, %v1319_v53  ;;  %vm833_vm11 = vcmp.eq.f32.partialorder %v832_v57, 8.507059e+37 }
  0xe1   : > { %v1111_v8 = vpop.eup %1110  ;;  %v1050_v37 = vmul.f32 -1.442695, %v1392_v4  ;;  %v827_v22 = vadd.f32 %v1380_v56, %v826_v12  ;;  %v835_v5 = vor.u32 1.1754944e-38, %v834_v58  ;;  %v892_v10 = vadd.f32 %v884_v60, %v883_v35 }
  0xe2   : > { %v1408_v11 = vpop.eup %1112  ;;  %v1413_v15 = vadd.f32 1.0, %v1111_v8  ;;  %v886_v53 = vmul.f32 %v821_v62, %v1324_v61  ;;  %v850_v13 = vor.u32 1.1754944e-38, %v849_v0  ;;  %vm848_vm15 = vcmp.eq.f32.partialorder %v847_v1, 8.507059e+37 }
  0xe3   : > { %v839_v20 = vmul.f32 %v1408_v11, %v1376_v50  ;;  %1114 = vpow2.f32 %v1050_v37  ;;  %vm844_vm7 = vweird.f32 %v1408_v11  ;;  %v831_v44 = vsel %vm1481_vm8, %v1380_v56, %v827_v22 }
  0xe4   : > { %1116 = vrcp.f32 %v1413_v15  ;;  %vm1492_vm12 = vmor %vm843_vm9, %vm844_vm7  ;;  %v864_v7 = vand.u32 2147483648, %v1413_v15  ;;  %vm858_vm13 = vweird.f32 %v1413_v15  ;;  %v862_v50 = vand.u32 2147483647, %v1413_v15 }
  0xe5   : > { %v840_v29 = vsub.f32 1.0, %v839_v20  ;;  %v836_v37 = vsel %vm833_vm11, %v835_v5, %v831_v44  ;;  %v893_v19 = vadd.f32 %v892_v10, %v885_v51 }
  0xe6   : > { %v865_v21 = vor.u32 1.1754944e-38, %v864_v7  ;;  %vm863_vm0 = vcmp.eq.f32.partialorder %v862_v50, 8.507059e+37 }
  0xe7   : > { %v841_v41 = vmul.f32 %v1408_v11, %v840_v29  ;;  %v894_v26 = vadd.f32 %v893_v19, %v886_v53 }
  0xe9   : > { %v1115_v42 = vpop.eup %1114  ;;  %v842_v59 = vadd.f32 %v1408_v11, %v841_v41 }
  0xea   : > { %v1117_v45 = vpop.eup %1116  ;;  %v762_v52 = vadd.f32 1.0, %v1115_v42 }
  0xeb   : > { %v854_v54 = vmul.f32 %v1117_v45, %v1413_v15  ;;  %vm859_vm10 = vweird.f32 %v1117_v45  ;;  %v846_v8 = vsel %vm1492_vm12, %v1408_v11, %v842_v59  ;;  %v887_v11 = vmul.f32 %v836_v37, %v1330_v9 }
  0xec   : > { %1118 = vrcp.f32 %v762_v52  ;;  %vm860_vm14 = vmor %vm858_vm13, %vm859_vm10  ;;  %v851_v20 = vsel %vm848_vm15, %v850_v13, %v846_v8  ;;  %v879_v27 = vand.u32 2147483648, %v762_v52  ;;  %v877_v29 = vand.u32 2147483647, %v762_v52 }
  0xed   : > { %v855_v40 = vsub.f32 1.0, %v854_v54  ;;  %v888_v28 = vmul.f32 %v851_v20, %v1344_v24  ;;  %v895_v30 = vadd.f32 %v894_v26, %v887_v11  ;;  %vm873_vm2 = vweird.f32 %v762_v52 }
  0xee   : > { %v880_v32 = vor.u32 1.1754944e-38, %v879_v27  ;;  %vm878_vm4 = vcmp.eq.f32.partialorder %v877_v29, 8.507059e+37 }
  0xef   : > { %v856_v2 = vmul.f32 %v1117_v45, %v855_v40  ;;  %v896_v9 = vadd.f32 %v895_v30, %v888_v28 }
  0xf1   : > { %v857_v3 = vadd.f32 %v1117_v45, %v856_v2 }
  0xf2   : > { %v1119_v56 = vpop.eup %1118 }
  0xf3   : > { %v861_v14 = vsel %vm860_vm14, %v1117_v45, %v857_v3  ;;  %v869_v18 = vmul.f32 %v1119_v56, %v762_v52  ;;  %vm874_vm1 = vweird.f32 %v1119_v56 }
  0xf4   : > { %v866_v15 = vsel %vm863_vm0, %v865_v21, %v861_v14  ;;  %vm875_vm3 = vmor %vm873_vm2, %vm874_vm1 }
  0xf5   : > { %v870_v23 = vsub.f32 1.0, %v869_v18  ;;  %v889_v17 = vmul.f32 %v866_v15, %v1367_v39 }
  0xf7   : > { %v871_v61 = vmul.f32 %v1119_v56, %v870_v23  ;;  %v897_v35 = vadd.f32 %v896_v9, %v889_v17 }
  0xf9   : > { %v872_v31 = vadd.f32 %v1119_v56, %v871_v61 }
  0xfb   : > { %v876_v33 = vsel %vm875_vm3, %v1119_v56, %v872_v31 }
  0xfc   : > { %v881_v12 = vsel %vm878_vm4, %v880_v32, %v876_v33 }
  0xfd   : > { %v890_v24 = vmul.f32 %v881_v12, %v1392_v4 }
  0xff   : > { %v898_v36 = vadd.f32 %v897_v35, %v890_v24 }
 0x101   : > { %v899_v16 = vrot.slane %v898_v36, 4 }
 0x103   : > { %v900_v38 = vadd.f32 %v899_v16, %v898_v36 }
 0x105   : > { %v901_v42 = vrot.slane %v900_v38, 2 }
 0x107   : > { %v902_v39 = vadd.f32 %v901_v42, %v900_v38 }
 0x109   : > { %v903_v25 = vrot.slane %v902_v39, 1 }
 0x10b   : > { %v904_v41 = vadd.f32 %v903_v25, %v902_v39 }
 0x10d   : > { %v905_v45 = vadd.f32 %v904_v41, %v891_v43 }
 0x10f   : > { %906 = vst [vmem:[%s1364_s25] sm:$0x1] %v905_v45 }
 0x116   : > { %v910_v46 = vld [vmem:[%s1364_s25] sm:$0x1] }
 0x117   : > { %v911_v47 = vmul.f32 0.015625, %v910_v46 }
 0x119   : > { %912 = vst [vmem:[%s1364_s25] sm:$0x1] %v911_v47 }
 0x11a PF: > { %s14_s17 = sadd.s32 1, %s1142_s17   ;;  %s1546_s15 = smov %s1138_s16 }
 0x11b   : > { %p11_p5 = scmp.ge.s32.totalorder %s14_s17, 4   ;;  %s1547_s16 = smov %s1549_s18 }
 0x11d   :  { %13 = sbr.rel (!%p11_p5) target bundleno = 2 (0x2), region = 80 }

// kernel: _lambda_.3
= control target key start
LH: loop header
LB: loop body
LE: loop exit
PB: predicated region body
PF: predicated region fallthrough
CT: control target
= control target key end

     0   :  { %15 = vsyncpa [#allocation3], 0  ;;  %s321_s16 = smov [#allocation2]   ;;  %s686_s0 = inlined_call_operand.vmem [shape: f32[2], index: 0, kind: input, shape index: {}]   ;;  %s687_s1 = inlined_call_operand.vmem [shape: f32[8,128], index: 1, kind: input, shape index: {}]   ;;  %s688_s2 = inlined_call_operand.vmem [shape: f32[128,128], index: 2, kind: input, shape index: {}]   ;;  %s689_s3 = inlined_call_operand.vmem [shape: f32[1,128], index: 3, kind: input, shape index: {}]   ;;  %s690_s4 = inlined_call_operand.vmem [shape: f32[128,256], index: 4, kind: input, shape index: {}]   ;;  %s691_s5 = inlined_call_operand.vmem [shape: f32[1,256], index: 5, kind: input, shape index: {}]   ;;  %s692_s6 = inlined_call_operand.vmem [shape: f32[256,128], index: 6, kind: input, shape index: {}]   ;;  %s693_s7 = inlined_call_operand.vmem [shape: f32[1,128], index: 7, kind: input, shape index: {}]   ;;  %s694_s8 = inlined_call_operand.vmem [shape: f32[128,128], index: 8, kind: input, shape index: {}]   ;;  %s695_s9 = inlined_call_operand.vmem [shape: f32[1,128], index: 9, kind: input, shape index: {}]   ;;  %s696_s10 = inlined_call_operand.vmem [shape: f32[8,128], index: 10, kind: output, shape index: {}]  }
   0x1   :  { %s21_s15 = sshll.u32 %s686_s0, 4  ;;  %s22_s15 = int_to_ptr.vmem [resolvable:$true] %s21_s15 }
   0x2   :  { %24 = dma.vmem_to_smem %s22_s15, 16, %s321_s16, [#allocation3]  }
   0x3   :  { %319 = dma.done.wait [#allocation3], 16  }
   0x4   :  { %320 = vsyncadd [#allocation3], 4294967280 }
   0x5   :  { %47 = sfence }
   0x6   :  { %v64_v0 = vld [vmem:[%s688_s2 + $0x78] sm:$0xff]  ;;  %v63_v1 = vld [vmem:[%s688_s2 + $0x70] sm:$0xff]  ;;  %v62_v2 = vld [vmem:[%s688_s2 + $0x68] sm:$0xff]  ;;  %s169_s14 = sld [smem:[#allocation2]] }
   0x7   :  { %69 = vmatpush.msra.mxu0 %v64_v0  ;;  %v61_v3 = vld [vmem:[%s688_s2 + $0x60] sm:$0xff]  ;;  %v60_v4 = vld [vmem:[%s688_s2 + $0x58] sm:$0xff]  ;;  %v119_v5 = vld [vmem:[%s690_s4 + $0xf0] sm:$0xff] }
   0x8   :  { %127 = vmatpush.msra.mxu1 %v119_v5  ;;  %v120_v6 = vld [vmem:[%s690_s4 + $0xf8] sm:$0xff]  ;;  %v117_v7 = vld [vmem:[%s690_s4 + $0xe0] sm:$0xff]  ;;  %v118_v8 = vld [vmem:[%s690_s4 + $0xe8] sm:$0xff] }
   0x9   :  { %70 = vmatpush.msra.mxu0 %v63_v1  ;;  %147 = vmatpush.msra.mxu2 %v120_v6  ;;  %v115_v9 = vld [vmem:[%s690_s4 + $0xd0] sm:$0xff]  ;;  %v116_v11 = vld [vmem:[%s690_s4 + $0xd8] sm:$0xff]  ;;  %v113_v12 = vld [vmem:[%s690_s4 + $0xc0] sm:$0xff] }
   0xa   :  { %v59_v10 = vld [vmem:[%s688_s2 + $0x50] sm:$0xff]  ;;  %128 = vmatpush.msra.mxu1 %v117_v7  ;;  %v58_v13 = vld [vmem:[%s688_s2 + $0x48] sm:$0xff]  ;;  %v57_v16 = vld [vmem:[%s688_s2 + $0x40] sm:$0xff] }
   0xb   :  { %71 = vmatpush.msra.mxu0 %v62_v2  ;;  %148 = vmatpush.msra.mxu2 %v118_v8  ;;  %v114_v14 = vld [vmem:[%s690_s4 + $0xc8] sm:$0xff]  ;;  %v111_v15 = vld [vmem:[%s690_s4 + $0xb0] sm:$0xff]  ;;  %v112_v17 = vld [vmem:[%s690_s4 + $0xb8] sm:$0xff] }
   0xc   :  { %129 = vmatpush.msra.mxu1 %v115_v9  ;;  %v109_v18 = vld [vmem:[%s690_s4 + $0xa0] sm:$0xff]  ;;  %v56_v19 = vld [vmem:[%s688_s2 + $0x38] sm:$0xff]  ;;  %v110_v20 = vld [vmem:[%s690_s4 + $0xa8] sm:$0xff] }
   0xd   :  { %72 = vmatpush.msra.mxu0 %v61_v3  ;;  %149 = vmatpush.msra.mxu2 %v116_v11  ;;  %v107_v21 = vld [vmem:[%s690_s4 + $0x90] sm:$0xff]  ;;  %v108_v23 = vld [vmem:[%s690_s4 + $0x98] sm:$0xff]  ;;  %v105_v24 = vld [vmem:[%s690_s4 + $0x80] sm:$0xff] }
   0xe   :  { %130 = vmatpush.msra.mxu1 %v113_v12  ;;  %v55_v22 = vld [vmem:[%s688_s2 + $0x30] sm:$0xff]  ;;  %v54_v25 = vld [vmem:[%s688_s2 + $0x28] sm:$0xff]  ;;  %v53_v28 = vld [vmem:[%s688_s2 + $0x20] sm:$0xff] }
   0xf   :  { %73 = vmatpush.msra.mxu0 %v60_v4  ;;  %150 = vmatpush.msra.mxu2 %v114_v14  ;;  %v106_v26 = vld [vmem:[%s690_s4 + $0x88] sm:$0xff]  ;;  %v103_v27 = vld [vmem:[%s690_s4 + $0x70] sm:$0xff]  ;;  %v104_v29 = vld [vmem:[%s690_s4 + $0x78] sm:$0xff] }
  0x10   :  { %131 = vmatpush.msra.mxu1 %v111_v15  ;;  %v101_v30 = vld [vmem:[%s690_s4 + $0x60] sm:$0xff]  ;;  %v52_v31 = vld [vmem:[%s688_s2 + $0x18] sm:$0xff]  ;;  %v102_v32 = vld [vmem:[%s690_s4 + $0x68] sm:$0xff] }
  0x11   :  { %74 = vmatpush.msra.mxu0 %v59_v10  ;;  %151 = vmatpush.msra.mxu2 %v112_v17  ;;  %v99_v33 = vld [vmem:[%s690_s4 + $0x50] sm:$0xff]  ;;  %v100_v35 = vld [vmem:[%s690_s4 + $0x58] sm:$0xff]  ;;  %v97_v36 = vld [vmem:[%s690_s4 + $0x40] sm:$0xff] }
  0x12   :  { %132 = vmatpush.msra.mxu1 %v109_v18  ;;  %v51_v34 = vld [vmem:[%s688_s2 + $0x10] sm:$0xff]  ;;  %v50_v37 = vld [vmem:[%s688_s2 + $0x8] sm:$0xff]  ;;  %v49_v40 = vld [vmem:[%s688_s2] sm:$0xff] }
  0x13   :  { %75 = vmatpush.msra.mxu0 %v58_v13  ;;  %152 = vmatpush.msra.mxu2 %v110_v20  ;;  %v98_v38 = vld [vmem:[%s690_s4 + $0x48] sm:$0xff]  ;;  %v95_v39 = vld [vmem:[%s690_s4 + $0x30] sm:$0xff]  ;;  %v96_v41 = vld [vmem:[%s690_s4 + $0x38] sm:$0xff] }
  0x14   :  { %133 = vmatpush.msra.mxu1 %v107_v21  ;;  %v48_v42 = vld [vmem:[%s687_s1] sm:$0xff]  ;;  %v94_v44 = vld [vmem:[%s690_s4 + $0x28] sm:$0xff]  ;;  %v91_v45 = vld [vmem:[%s690_s4 + $0x10] sm:$0xff] }
  0x15   :  { %76 = vmatpush.msra.mxu0 %v57_v16  ;;  %153 = vmatpush.msra.mxu2 %v108_v23  ;;  %v93_v43 = vld [vmem:[%s690_s4 + $0x20] sm:$0xff]  ;;  %v92_v46 = vld [vmem:[%s690_s4 + $0x18] sm:$0xff]  ;;  %v90_v48 = vld [vmem:[%s690_s4 + $0x8] sm:$0xff] }
  0x16   :  { %134 = vmatpush.msra.mxu1 %v105_v24  ;;  %v89_v47 = vld [vmem:[%s690_s4] sm:$0xff]  ;;  %v190_v49 = vld [vmem:[%s692_s6 + $0x78] sm:$0xff]  ;;  %v189_v50 = vld [vmem:[%s692_s6 + $0x70] sm:$0xff] }
  0x17   :  { %77 = vmatpush.msra.mxu0 %v56_v19  ;;  %154 = vmatpush.msra.mxu2 %v106_v26  ;;  %v206_v51 = vld [vmem:[%s692_s6 + $0xf8] sm:$0xff]  ;;  %v188_v52 = vld [vmem:[%s692_s6 + $0x68] sm:$0xff]  ;;  %v205_v53 = vld [vmem:[%s692_s6 + $0xf0] sm:$0xff] }
  0x18   :  { %135 = vmatpush.msra.mxu1 %v103_v27  ;;  %211 = vmatpush.msra.mxu3 %v190_v49  ;;  %v204_v54 = vld [vmem:[%s692_s6 + $0xe8] sm:$0xff]  ;;  %v187_v55 = vld [vmem:[%s692_s6 + $0x60] sm:$0xff]  ;;  %v186_v57 = vld [vmem:[%s692_s6 + $0x58] sm:$0xff] }
  0x19   :  { %78 = vmatpush.msra.mxu0 %v55_v22  ;;  %155 = vmatpush.msra.mxu2 %v104_v29  ;;  %v203_v56 = vld [vmem:[%s692_s6 + $0xe0] sm:$0xff]  ;;  %v202_v58 = vld [vmem:[%s692_s6 + $0xd8] sm:$0xff]  ;;  %v185_v59 = vld [vmem:[%s692_s6 + $0x50] sm:$0xff] }
  0x1a   :  { %136 = vmatpush.msra.mxu1 %v101_v30  ;;  %212 = vmatpush.msra.mxu3 %v189_v50  ;;  %v201_v60 = vld [vmem:[%s692_s6 + $0xd0] sm:$0xff]  ;;  %v184_v61 = vld [vmem:[%s692_s6 + $0x48] sm:$0xff]  ;;  %v183_v63 = vld [vmem:[%s692_s6 + $0x40] sm:$0xff] }
  0x1b   :  { %79 = vmatpush.msra.mxu0 %v54_v25  ;;  %156 = vmatpush.msra.mxu2 %v102_v32  ;;  %v200_v62 = vld [vmem:[%s692_s6 + $0xc8] sm:$0xff]  ;;  %v199_v0 = vld [vmem:[%s692_s6 + $0xc0] sm:$0xff]  ;;  %v182_v1 = vld [vmem:[%s692_s6 + $0x38] sm:$0xff] }
  0x1c   :  { %137 = vmatpush.msra.mxu1 %v99_v33  ;;  %213 = vmatpush.msra.mxu3 %v188_v52  ;;  %v198_v2 = vld [vmem:[%s692_s6 + $0xb8] sm:$0xff]  ;;  %v181_v3 = vld [vmem:[%s692_s6 + $0x30] sm:$0xff]  ;;  %v180_v5 = vld [vmem:[%s692_s6 + $0x28] sm:$0xff] }
  0x1d   :  { %80 = vmatpush.msra.mxu0 %v53_v28  ;;  %157 = vmatpush.msra.mxu2 %v100_v35  ;;  %v197_v4 = vld [vmem:[%s692_s6 + $0xb0] sm:$0xff]  ;;  %v179_v6 = vld [vmem:[%s692_s6 + $0x20] sm:$0xff]  ;;  %v178_v7 = vld [vmem:[%s692_s6 + $0x18] sm:$0xff] }
  0x1e   :  { %138 = vmatpush.msra.mxu1 %v97_v36  ;;  %214 = vmatpush.msra.mxu3 %v187_v55  ;;  %v304_v8 = vld [vmem:[%s689_s3] ss:$0 sm:$0xff]  ;;  %v177_v11 = vld [vmem:[%s692_s6 + $0x10] sm:$0xff]  ;;  %v196_v12 = vld [vmem:[%s692_s6 + $0xa8] sm:$0xff] }
  0x1f   :  { %81 = vmatpush.msra.mxu0 %v52_v31  ;;  %158 = vmatpush.msra.mxu2 %v98_v38  ;;  %v176_v13 = vld [vmem:[%s692_s6 + $0x8] sm:$0xff]  ;;  %v195_v14 = vld [vmem:[%s692_s6 + $0xa0] sm:$0xff]  ;;  %v194_v16 = vld [vmem:[%s692_s6 + $0x98] sm:$0xff] }
  0x20   :  { %139 = vmatpush.msra.mxu1 %v95_v39  ;;  %215 = vmatpush.msra.mxu3 %v186_v57  ;;  %v175_v15 = vld [vmem:[%s692_s6] sm:$0xff]  ;;  %v193_v17 = vld [vmem:[%s692_s6 + $0x90] sm:$0xff]  ;;  %v192_v18 = vld [vmem:[%s692_s6 + $0x88] sm:$0xff] }
  0x21   :  { %82 = vmatpush.msra.mxu0 %v51_v34  ;;  %159 = vmatpush.msra.mxu2 %v96_v41  ;;  %v191_v19 = vld [vmem:[%s692_s6 + $0x80] sm:$0xff]  ;;  %v271_v20 = vld [vmem:[%s694_s8 + $0x78] sm:$0xff]  ;;  %v270_v21 = vld [vmem:[%s694_s8 + $0x70] sm:$0xff]  ;;  %v170_v34 = vstv %s169_s14  ;;  %s302_s6 = sld [smem:[#allocation2 + $0x1]] }
  0x22   :  { %140 = vmatpush.msra.mxu1 %v93_v43  ;;  %216 = vmatpush.msra.mxu3 %v185_v59  ;;  %v269_v22 = vld [vmem:[%s694_s8 + $0x68] sm:$0xff]  ;;  %v268_v23 = vld [vmem:[%s694_s8 + $0x60] sm:$0xff]  ;;  %v267_v24 = vld [vmem:[%s694_s8 + $0x58] sm:$0xff] }
  0x23   :  { %83 = vmatpush.msra.mxu0 %v50_v37  ;;  %160 = vmatpush.msra.mxu2 %v94_v44  ;;  %v266_v25 = vld [vmem:[%s694_s8 + $0x50] sm:$0xff]  ;;  %v265_v26 = vld [vmem:[%s694_s8 + $0x48] sm:$0xff]  ;;  %v264_v27 = vld [vmem:[%s694_s8 + $0x40] sm:$0xff] }
  0x24   :  { %141 = vmatpush.msra.mxu1 %v91_v45  ;;  %217 = vmatpush.msra.mxu3 %v184_v61  ;;  %v121_v28 = vld [vmem:[%s691_s5] sm:$0x3]  ;;  %v263_v29 = vld [vmem:[%s694_s8 + $0x38] sm:$0xff]  ;;  %v262_v30 = vld [vmem:[%s694_s8 + $0x30] sm:$0xff] }
  0x25   :  { %84 = vmatpush.msra.mxu0 %v49_v40  ;;  %161 = vmatpush.msra.mxu2 %v92_v46  ;;  %v123_v31 = vperm.slane %v121_v28, 0  ;;  %v261_v32 = vld [vmem:[%s694_s8 + $0x28] sm:$0xff]  ;;  %v260_v35 = vld [vmem:[%s694_s8 + $0x20] sm:$0xff]  ;;  %v124_v37 = vperm.slane %v121_v28, 1  ;;  %v259_v44 = vld [vmem:[%s694_s8 + $0x18] sm:$0xff] }
  0x26   :  { %85 = vmatmul.f32.vlgmr.msra.gmra.mxu0 %v48_v42  ;;  %142 = vmatpush.msra.mxu1 %v89_v47  ;;  %v258_v45 = vld [vmem:[%s694_s8 + $0x10] sm:$0xff]  ;;  %v257_v46 = vld [vmem:[%s694_s8 + $0x8] sm:$0xff]  ;;  %v256_v47 = vld [vmem:[%s694_s8] sm:$0xff] }
  0x27   :  { %162 = vmatpush.msra.mxu2 %v90_v48  ;;  %231 = vmatpush.msrb.mxu0 %v206_v51  ;;  %v305_v48 = vld [vmem:[%s693_s7] ss:$0 sm:$0xff]  ;;  %v253_v52 = vstv %s302_s6 }
  0x28   :  { %218 = vmatpush.msra.mxu3 %v183_v63  ;;  %276 = vmatpush.msrb.mxu1 %v271_v20 }
  0x29   :  { %232 = vmatpush.msrb.mxu0 %v205_v53 }
  0x2a   :  { %219 = vmatpush.msra.mxu3 %v182_v1  ;;  %277 = vmatpush.msrb.mxu1 %v270_v21 }
  0x2b   :  { %233 = vmatpush.msrb.mxu0 %v204_v54 }
  0x2c   :  { %220 = vmatpush.msra.mxu3 %v181_v3  ;;  %278 = vmatpush.msrb.mxu1 %v269_v22 }
  0x2d   :  { %234 = vmatpush.msrb.mxu0 %v203_v56  ;;  %v306_v56 = vld [vmem:[%s695_s9] ss:$0 sm:$0xff] }
  0x2e   :  { %221 = vmatpush.msra.mxu3 %v180_v5  ;;  %279 = vmatpush.msrb.mxu1 %v268_v23 }
  0x2f   :  { %235 = vmatpush.msrb.mxu0 %v202_v58 }
  0x30   :  { %222 = vmatpush.msra.mxu3 %v179_v6  ;;  %280 = vmatpush.msrb.mxu1 %v267_v24 }
  0x31   :  { %236 = vmatpush.msrb.mxu0 %v201_v60 }
  0x32   :  { %223 = vmatpush.msra.mxu3 %v178_v7  ;;  %281 = vmatpush.msrb.mxu1 %v266_v25 }
  0x33   :  { %237 = vmatpush.msrb.mxu0 %v200_v62 }
  0x34   :  { %224 = vmatpush.msra.mxu3 %v177_v11  ;;  %282 = vmatpush.msrb.mxu1 %v265_v26 }
  0x35   :  { %238 = vmatpush.msrb.mxu0 %v199_v0 }
  0x36   :  { %225 = vmatpush.msra.mxu3 %v176_v13  ;;  %283 = vmatpush.msrb.mxu1 %v264_v27 }
  0x37   :  { %239 = vmatpush.msrb.mxu0 %v198_v2 }
  0x38   :  { %226 = vmatpush.msra.mxu3 %v175_v15  ;;  %284 = vmatpush.msrb.mxu1 %v263_v29 }
  0x39   :  { %240 = vmatpush.msrb.mxu0 %v197_v4 }
  0x3a   :  { %285 = vmatpush.msrb.mxu1 %v262_v30 }
  0x3b   :  { %241 = vmatpush.msrb.mxu0 %v196_v12 }
  0x3c   :  { %286 = vmatpush.msrb.mxu1 %v261_v32 }
  0x3d   :  { %242 = vmatpush.msrb.mxu0 %v195_v14 }
  0x3e   :  { %287 = vmatpush.msrb.mxu1 %v260_v35 }
  0x3f   :  { %243 = vmatpush.msrb.mxu0 %v194_v16 }
  0x40   :  { %288 = vmatpush.msrb.mxu1 %v259_v44 }
  0x41   :  { %244 = vmatpush.msrb.mxu0 %v193_v17 }
  0x42   :  { %289 = vmatpush.msrb.mxu1 %v258_v45 }
  0x43   :  { %245 = vmatpush.msrb.mxu0 %v192_v18 }
  0x44   :  { %290 = vmatpush.msrb.mxu1 %v257_v46 }
  0x45   :  { %246 = vmatpush.msrb.mxu0 %v191_v19 }
  0x46   :  { %291 = vmatpush.msrb.mxu1 %v256_v47 }
  0xa3   :  { %v86_v9 = vpop.f32.mrf.mxu0 }
  0xa4   :  { %v87_v10 = vadd.f32 %v304_v8, %v86_v9 }
  0xa6   :  { %143 = vmatmul.f32.vlgmr.msra.gmra.mxu1 %v87_v10  ;;  %163 = vmatmul.f32.vlgmr.msra.gmra.mxu2 %v87_v10 }
 0x123   :  { %v144_v33 = vpop.f32.mrf.mxu1 }
 0x124   :  { %v145_v36 = vadd.f32 %v144_v33, %v123_v31 }
 0x126   :  { %vm167_vm0 = vcmp.ge.f32.partialorder %v145_v36, 0.0  ;;  %v171_v38 = vmul.f32 %v170_v34, %v145_v36 }
 0x128   :  { %v173_v39 = vsel %vm167_vm0, %v145_v36, %v171_v38 }
 0x129   :  { %v164_v40 = vpop.f32.mrf.mxu2  ;;  %227 = vmatmul.f32.vlgmr.msra.gmra.mxu3 %v173_v39 }
 0x12a   :  { %v165_v41 = vadd.f32 %v164_v40, %v124_v37 }
 0x12c   :  { %v172_v42 = vmul.f32 %v170_v34, %v165_v41  ;;  %vm168_vm1 = vcmp.ge.f32.partialorder %v165_v41, 0.0 }
 0x12e   :  { %v174_v43 = vsel %vm168_vm1, %v165_v41, %v172_v42 }
 0x12f   :  { %247 = vmatmul.f32.vlgmr.msrb.gmra.mxu0 %v174_v43 }
 0x1ac   :  { %v228_v49 = vpop.f32.mrf.mxu3  ;;  %v248_v51 = vpop.f32.mrf.mxu0 }
 0x1ad   :  { %v229_v50 = vadd.f32 %v305_v48, %v228_v49 }
 0x1af   :  { %v249_v53 = vadd.f32 %v248_v51, %v229_v50 }
 0x1b1   :  { %v254_v54 = vmul.f32 %v253_v52, %v249_v53  ;;  %vm251_vm2 = vcmp.ge.f32.partialorder %v249_v53, 0.0 }
 0x1b3   :  { %v255_v55 = vsel %vm251_vm2, %v249_v53, %v254_v54 }
 0x1b4   :  { %292 = vmatmul.f32.vlgmr.msrb.gmra.mxu1 %v255_v55 }
 0x231   :  { %v293_v57 = vpop.f32.mrf.mxu1 }
 0x232   :  { %v294_v58 = vadd.f32 %v306_v56, %v293_v57 }
 0x234   :  { %296 = vst [vmem:[%s696_s10] sm:$0xff] %v294_v58 }
 0x235   :  { %301 = vsyncpa [#allocation3], 1 }

</bundles_post_ra>
